<compile_context>
chip_gen: v7x
topology: tpu7x:2x2x1
jax: 0.10.0
libtpu: 0.0.40
codegen_flags: <defaults>
</compile_context>

<pallas_src>
import functools

import jax
import jax.numpy as jnp
from jax import lax
from jax.experimental import pallas as pl
from jax.experimental.pallas import tpu as pltpu

_NORM_VMEM_LIMIT = 32 * 1024 * 1024  # safe on v5e(128 MiB)/v6e(128)/v7x(64)


# ---------------------------------------------------------------------------
# Generic tiled matmul  (qkv_proj / down_proj)
# ---------------------------------------------------------------------------
def _matmul_kernel(x_ref, w_ref, o_ref, acc_ref):
    @pl.when(pl.program_id(2) == 0)
    def _():
        acc_ref[...] = jnp.zeros_like(acc_ref)

    acc_ref[...] += jnp.dot(x_ref[...], w_ref[...],
                            preferred_element_type=jnp.float32)

    @pl.when(pl.program_id(2) == pl.num_programs(2) - 1)
    def _():
        o_ref[...] = acc_ref[...].astype(o_ref.dtype)


def matmul(x, w, *, tm=256, tn=256, tk=512):
    M, K = x.shape
    K2, N = w.shape
    assert K == K2
    tm, tn, tk = min(tm, M), min(tn, N), min(tk, K)
    grid = (pl.cdiv(M, tm), pl.cdiv(N, tn), pl.cdiv(K, tk))
    return pl.pallas_call(
        _matmul_kernel,
        out_shape=jax.ShapeDtypeStruct((M, N), x.dtype),
        grid_spec=pltpu.PrefetchScalarGridSpec(
            num_scalar_prefetch=0,
            grid=grid,
            in_specs=[
                pl.BlockSpec((tm, tk), lambda i, j, k: (i, k)),
                pl.BlockSpec((tk, tn), lambda i, j, k: (k, j)),
            ],
            out_specs=pl.BlockSpec((tm, tn), lambda i, j, k: (i, j)),
            scratch_shapes=[pltpu.VMEM((tm, tn), jnp.float32)],
        ),
        compiler_params=pltpu.CompilerParams(
            dimension_semantics=("parallel", "parallel", "arbitrary")),
    )(x, w)


# ---------------------------------------------------------------------------
# RMSNorm (vLLM semantics)  +  fused residual-add RMSNorm
# ---------------------------------------------------------------------------
def _rmsnorm_kernel(x_ref, w_ref, o_ref, *, eps):
    x = x_ref[...].astype(jnp.float32)
    var = jnp.mean(x * x, axis=-1, keepdims=True)
    o_ref[...] = (x * lax.rsqrt(var + eps) *
                  w_ref[...].astype(jnp.float32)).astype(o_ref.dtype)


def rmsnorm(x, w, *, eps):
    T, H = x.shape
    tt = min(128, T)   # 4 streams x 2 bufs x (128x4096xf32) = 8 MiB worst case
    return pl.pallas_call(
        functools.partial(_rmsnorm_kernel, eps=eps),
        out_shape=jax.ShapeDtypeStruct((T, H), x.dtype),
        grid_spec=pltpu.PrefetchScalarGridSpec(
            num_scalar_prefetch=0,
            grid=(pl.cdiv(T, tt),),
            in_specs=[
                pl.BlockSpec((tt, H), lambda i: (i, 0)),
                pl.BlockSpec((1, H), lambda i: (0, 0)),
            ],
            out_specs=pl.BlockSpec((tt, H), lambda i: (i, 0)),
        ),
        compiler_params=pltpu.CompilerParams(
            dimension_semantics=("parallel",),
            vmem_limit_bytes=_NORM_VMEM_LIMIT),
    )(x, w.reshape(1, H))


def _fused_add_rmsnorm_kernel(x_ref, r_ref, w_ref, o_ref, r_out_ref, *, eps):
    s = x_ref[...].astype(jnp.float32) + r_ref[...].astype(jnp.float32)
    r_out_ref[...] = s.astype(r_out_ref.dtype)
    var = jnp.mean(s * s, axis=-1, keepdims=True)
    o_ref[...] = (s * lax.rsqrt(var + eps) *
                  w_ref[...].astype(jnp.float32)).astype(o_ref.dtype)


def fused_add_rmsnorm(x, res, w, *, eps):
    T, H = x.shape
    tt = min(128, T)
    return pl.pallas_call(
        functools.partial(_fused_add_rmsnorm_kernel, eps=eps),
        out_shape=(jax.ShapeDtypeStruct((T, H), x.dtype),
                   jax.ShapeDtypeStruct((T, H), x.dtype)),
        grid_spec=pltpu.PrefetchScalarGridSpec(
            num_scalar_prefetch=0,
            grid=(pl.cdiv(T, tt),),
            in_specs=[
                pl.BlockSpec((tt, H), lambda i: (i, 0)),
                pl.BlockSpec((tt, H), lambda i: (i, 0)),
                pl.BlockSpec((1, H), lambda i: (0, 0)),
            ],
            out_specs=[
                pl.BlockSpec((tt, H), lambda i: (i, 0)),
                pl.BlockSpec((tt, H), lambda i: (i, 0)),
            ],
        ),
        compiler_params=pltpu.CompilerParams(
            dimension_semantics=("parallel",),
            vmem_limit_bytes=_NORM_VMEM_LIMIT),
    )(x, res, w.reshape(1, H))


# ---------------------------------------------------------------------------
# Fused qkv split + ChameleonLayerNorm (per-head) + neox RoPE + head-major
# layout.  Reads the qkv slab once, writes q:[H,T,D], k/v:[Hk,T,D] (so the
# attention / o_proj kernels never need an HBM transpose or GQA repeat).
# ---------------------------------------------------------------------------
def _qkv_norm_rope_kernel(qkv_ref, qw_ref, qb_ref, kw_ref, kb_ref,
                          cos_ref, sin_ref, q_out_ref, k_out_ref, v_out_ref,
                          *, num_heads, num_kv_heads, head_dim, eps):
    D = head_dim
    cos = cos_ref[...].astype(jnp.float32)          # [tt, D]  (full width)
    sin = sin_ref[...].astype(jnp.float32)          # [tt, D]  (sign folded)

    def ln_rope(x, w, b):                           # x: [tt, D] float32
        mean = jnp.mean(x, axis=-1, keepdims=True)
        var = jnp.mean(jnp.square(x - mean), axis=-1, keepdims=True)
        xn = (x - mean) * lax.rsqrt(var + eps) * w + b
        if D % 128 == 0:                            # lane-aligned: XLU rotate
            rot = pltpu.roll(xn, D // 2, axis=-1)
        else:                                       # small-D fallback
            rot = jnp.concatenate([xn[..., D // 2:], xn[..., :D // 2]],
                                  axis=-1)
        return xn * cos + rot * sin

    for h in range(num_heads):
        x = qkv_ref[:, pl.ds(h * D, D)].astype(jnp.float32)
        w = qw_ref[pl.ds(h, 1), :].astype(jnp.float32)
        b = qb_ref[pl.ds(h, 1), :].astype(jnp.float32)
        q_out_ref[h, :, :] = ln_rope(x, w, b).astype(q_out_ref.dtype)

    q_off = num_heads * D
    for h in range(num_kv_heads):
        x = qkv_ref[:, pl.ds(q_off + h * D, D)].astype(jnp.float32)
        w = kw_ref[pl.ds(h, 1), :].astype(jnp.float32)
        b = kb_ref[pl.ds(h, 1), :].astype(jnp.float32)
        k_out_ref[h, :, :] = ln_rope(x, w, b).astype(k_out_ref.dtype)

    kv_off = (num_heads + num_kv_heads) * D
    for h in range(num_kv_heads):
        v_out_ref[h, :, :] = qkv_ref[:, pl.ds(kv_off + h * D, D)]


def qkv_norm_rope(qkv, qw, qb, kw, kb, cos, sin, *,
                  num_heads, num_kv_heads, head_dim, eps):
    T, W = qkv.shape
    H, Hk, D = num_heads, num_kv_heads, head_dim
    assert W == (H + 2 * Hk) * D
    tt = min(128, T)
    kern = functools.partial(_qkv_norm_rope_kernel, num_heads=H,
                             num_kv_heads=Hk, head_dim=D, eps=eps)
    return pl.pallas_call(
        kern,
        out_shape=(jax.ShapeDtypeStruct((H, T, D), qkv.dtype),
                   jax.ShapeDtypeStruct((Hk, T, D), qkv.dtype),
                   jax.ShapeDtypeStruct((Hk, T, D), qkv.dtype)),
        grid_spec=pltpu.PrefetchScalarGridSpec(
            num_scalar_prefetch=0,
            grid=(pl.cdiv(T, tt),),
            in_specs=[
                pl.BlockSpec((tt, W), lambda i: (i, 0)),
                pl.BlockSpec((H, D), lambda i: (0, 0)),
                pl.BlockSpec((H, D), lambda i: (0, 0)),
                pl.BlockSpec((Hk, D), lambda i: (0, 0)),
                pl.BlockSpec((Hk, D), lambda i: (0, 0)),
                pl.BlockSpec((tt, D), lambda i: (i, 0)),
                pl.BlockSpec((tt, D), lambda i: (i, 0)),
            ],
            out_specs=[
                pl.BlockSpec((H, tt, D), lambda i: (0, i, 0)),
                pl.BlockSpec((Hk, tt, D), lambda i: (0, i, 0)),
                pl.BlockSpec((Hk, tt, D), lambda i: (0, i, 0)),
            ],
        ),
        compiler_params=pltpu.CompilerParams(
            dimension_semantics=("parallel",),
            vmem_limit_bytes=_NORM_VMEM_LIMIT),
    )(qkv, qw, qb, kw, kb, cos, sin)


# ---------------------------------------------------------------------------
# GQA causal flash attention (online softmax).
#   q: [H, T, D], k/v: [Hk, T, D] (un-expanded); GQA handled by index_map.
#   K/V index_map is clamped to the diagonal so skipped blocks issue no DMA.
# ---------------------------------------------------------------------------
def _causal_attn_kernel(q_ref, k_ref, v_ref, o_ref, m_sc, l_sc, acc_sc,
                        *, scale, tq, tk):
    qi = pl.program_id(1)
    ki = pl.program_id(2)

    @pl.when(ki == 0)
    def _():
        m_sc[...] = jnp.full_like(m_sc, -1e30)
        l_sc[...] = jnp.zeros_like(l_sc)
        acc_sc[...] = jnp.zeros_like(acc_sc)

    # Skip kv blocks strictly above the causal diagonal (compute only; the
    # matching index_map clamp below already skips their DMA).
    @pl.when(ki * tk <= qi * tq + (tq - 1))
    def _():
        q = q_ref[0] * scale                         # native dtype, scale folded
        k = k_ref[0]
        v = v_ref[0]
        s = lax.dot_general(q, k, (((1,), (1,)), ((), ())),
                            preferred_element_type=jnp.float32)
        row = qi * tq + lax.broadcasted_iota(jnp.int32, (tq, tk), 0)
        col = ki * tk + lax.broadcasted_iota(jnp.int32, (tq, tk), 1)
        s = jnp.where(row >= col, s, -1e30)
        m_prev = m_sc[...]
        m_new = jnp.maximum(m_prev, jnp.max(s, axis=-1, keepdims=True))
        alpha = jnp.exp(m_prev - m_new)
        p = jnp.exp(s - m_new)
        l_sc[...] = alpha * l_sc[...] + jnp.sum(p, axis=-1, keepdims=True)
        acc_sc[...] = alpha * acc_sc[...] + jnp.dot(
            p.astype(v.dtype), v, preferred_element_type=jnp.float32)
        m_sc[...] = m_new

    @pl.when(ki == pl.num_programs(2) - 1)
    def _():
        o_ref[0] = (acc_sc[...] *
                    pl.reciprocal(l_sc[...], approx=True)).astype(o_ref.dtype)


def causal_attention(q, k, v, *, scale, tq=None, tk=None):
    H, T, D = q.shape
    Hk = k.shape[0]
    rep = H // Hk
    tq = min(256, T) if tq is None else min(tq, T)
    tk = min(256, T) if tk is None else min(tk, T)
    grid = (H, pl.cdiv(T, tq), pl.cdiv(T, tk))

    def kv_map(h, qi, ki):
        # clamp to the last block needed for this q tile -> no DMA for
        # causally-skipped blocks (Pallas re-uses the resident block).
        last = (qi * tq + (tq - 1)) // tk
        return (h // rep, jnp.minimum(ki, last), 0)

    kern = functools.partial(_causal_attn_kernel, scale=scale, tq=tq, tk=tk)
    return pl.pallas_call(
        kern,
        out_shape=jax.ShapeDtypeStruct((H, T, D), q.dtype),
        grid_spec=pltpu.PrefetchScalarGridSpec(
            num_scalar_prefetch=0,
            grid=grid,
            in_specs=[
                pl.BlockSpec((1, tq, D), lambda h, qi, ki: (h, qi, 0)),
                pl.BlockSpec((1, tk, D), kv_map),
                pl.BlockSpec((1, tk, D), kv_map),
            ],
            out_specs=pl.BlockSpec((1, tq, D), lambda h, qi, ki: (h, qi, 0)),
            scratch_shapes=[
                pltpu.VMEM((tq, 1), jnp.float32),
                pltpu.VMEM((tq, 1), jnp.float32),
                pltpu.VMEM((tq, D), jnp.float32),
            ],
        ),
        compiler_params=pltpu.CompilerParams(
            dimension_semantics=("parallel", "parallel", "arbitrary")),
    )(q, k, v)


# ---------------------------------------------------------------------------
# O projection straight from head-major attention output:
#   x: [H, T, D]  @  W_o: [H*D, hidden]  -> [T, hidden]
# Heads are the K-reduction axis; index_maps do the "transpose" for free.
# ---------------------------------------------------------------------------
def _oproj_kernel(x_ref, w_ref, o_ref, acc_ref):
    @pl.when(pl.program_id(2) == 0)
    def _():
        acc_ref[...] = jnp.zeros_like(acc_ref)

    acc_ref[...] += jnp.dot(x_ref[0], w_ref[0],
                            preferred_element_type=jnp.float32)

    @pl.when(pl.program_id(2) == pl.num_programs(2) - 1)
    def _():
        o_ref[...] = acc_ref[...].astype(o_ref.dtype)


def o_proj_heads(x_htd, w_o, *, tm=256, tn=256):
    H, T, D = x_htd.shape
    HD, N = w_o.shape
    assert HD == H * D
    w3 = w_o.reshape(H, D, N)          # contiguous reshape (no copy)
    tm, tn = min(tm, T), min(tn, N)
    grid = (pl.cdiv(T, tm), pl.cdiv(N, tn), H)
    return pl.pallas_call(
        _oproj_kernel,
        out_shape=jax.ShapeDtypeStruct((T, N), x_htd.dtype),
        grid_spec=pltpu.PrefetchScalarGridSpec(
            num_scalar_prefetch=0,
            grid=grid,
            in_specs=[
                pl.BlockSpec((1, tm, D), lambda i, j, h: (h, i, 0)),
                pl.BlockSpec((1, D, tn), lambda i, j, h: (h, 0, j)),
            ],
            out_specs=pl.BlockSpec((tm, tn), lambda i, j, h: (i, j)),
            scratch_shapes=[pltpu.VMEM((tm, tn), jnp.float32)],
        ),
        compiler_params=pltpu.CompilerParams(
            dimension_semantics=("parallel", "parallel", "arbitrary")),
    )(x_htd, w3)


# ---------------------------------------------------------------------------
# Fused SwiGLU:  out = silu(x @ Wg) * (x @ Wu),  fused weight w_gu: [2, K, N]
# (single DMA per K-step feeds both accumulators).
# ---------------------------------------------------------------------------
def _gate_up_silu_kernel(x_ref, w_ref, o_ref, gacc_ref, uacc_ref):
    k = pl.program_id(2)

    @pl.when(k == 0)
    def _():
        gacc_ref[...] = jnp.zeros_like(gacc_ref)
        uacc_ref[...] = jnp.zeros_like(uacc_ref)

    x = x_ref[...]
    gacc_ref[...] += jnp.dot(x, w_ref[0], preferred_element_type=jnp.float32)
    uacc_ref[...] += jnp.dot(x, w_ref[1], preferred_element_type=jnp.float32)

    @pl.when(k == pl.num_programs(2) - 1)
    def _():
        g = gacc_ref[...]
        o_ref[...] = (g * jax.nn.sigmoid(g) * uacc_ref[...]).astype(o_ref.dtype)


def gate_up_silu(x, w_gu, *, tm=256, tn=256, tk=512):
    M, K = x.shape
    two, K2, N = w_gu.shape
    assert two == 2 and K2 == K
    tm, tn, tk = min(tm, M), min(tn, N), min(tk, K)
    grid = (pl.cdiv(M, tm), pl.cdiv(N, tn), pl.cdiv(K, tk))
    return pl.pallas_call(
        _gate_up_silu_kernel,
        out_shape=jax.ShapeDtypeStruct((M, N), x.dtype),
        grid_spec=pltpu.PrefetchScalarGridSpec(
            num_scalar_prefetch=0,
            grid=grid,
            in_specs=[
                pl.BlockSpec((tm, tk), lambda i, j, k: (i, k)),
                pl.BlockSpec((2, tk, tn), lambda i, j, k: (0, k, j)),
            ],
            out_specs=pl.BlockSpec((tm, tn), lambda i, j, k: (i, j)),
            scratch_shapes=[pltpu.VMEM((tm, tn), jnp.float32),
                            pltpu.VMEM((tm, tn), jnp.float32)],
        ),
        compiler_params=pltpu.CompilerParams(
            dimension_semantics=("parallel", "parallel", "arbitrary")),
    )(x, w_gu)


# ---------------------------------------------------------------------------
# ChameleonDecoderLayer forward (Pallas-backed)
# ---------------------------------------------------------------------------
# TODO(synk): vLLM Attention's paged KV-cache / prefix caching is not modeled;
#             this computes full causal self-attention over the given tokens.
# TODO(synk): tensor-parallel sharding (QKV/Row/MergedColumnParallelLinear,
#             weight loaders) is not modeled; single-device weights.
def chameleon_decoder_layer(positions, hidden_states, residual, params, *,
                            num_heads, num_kv_heads, head_dim,
                            rms_eps=1e-6, ln_eps=1e-5, rope_theta=10000.0,
                            attn_tq=None, attn_tk=None):
    T, hidden = hidden_states.shape

    # ---- input RMSNorm (+ residual handling) ----
    if residual is None:
        residual = hidden_states
        h = rmsnorm(hidden_states, params["input_ln_w"], eps=rms_eps)
    else:
        h, residual = fused_add_rmsnorm(hidden_states, residual,
                                        params["input_ln_w"], eps=rms_eps)

    # ---- attention ----
    qkv = matmul(h, params["w_qkv"])                 # [T, (H+2Hk)*D]

    # RoPE tables (neox-style, rotary_dim == head_dim): full-width cos and
    # sign-folded sin so the kernel does  x*cos + rotate_half(x)*sin_signed.
    inv_freq = 1.0 / (rope_theta ** (
        jnp.arange(0, head_dim, 2, dtype=jnp.float32) / head_dim))
    freqs = positions.astype(jnp.float32)[:, None] * inv_freq[None, :]
    cos = jnp.concatenate([jnp.cos(freqs), jnp.cos(freqs)], axis=-1)   # [T,D]
    sin = jnp.concatenate([-jnp.sin(freqs), jnp.sin(freqs)], axis=-1)  # [T,D]

    q_htd, k_htd, v_htd = qkv_norm_rope(
        qkv, params["q_norm_w"], params["q_norm_b"],
        params["k_norm_w"], params["k_norm_b"], cos, sin,
        num_heads=num_heads, num_kv_heads=num_kv_heads,
        head_dim=head_dim, eps=ln_eps)

    scale = head_dim ** -0.5
    attn_htd = causal_attention(q_htd, k_htd, v_htd, scale=scale,
                                tq=attn_tq, tk=attn_tk)       # [H, T, D]
    attn_out = o_proj_heads(attn_htd, params["w_o"])          # [T, hidden]

    # ---- post-attention fused add + RMSNorm ----
    h2, residual = fused_add_rmsnorm(attn_out, residual,
                                     params["post_ln_w"], eps=rms_eps)

    # ---- MLP: fused SwiGLU then down projection ----
    inter = gate_up_silu(h2, params["w_gate_up"])
    out = matmul(inter, params["w_down"])
    return out, residual


# ---------------------------------------------------------------------------
# Pure-JAX reference (mirrors the PyTorch module semantics)
# ---------------------------------------------------------------------------
def _ref_rms(x, w, eps):
    xf = x.astype(jnp.float32)
    var = jnp.mean(xf * xf, axis=-1, keepdims=True)
    return (xf * lax.rsqrt(var + eps)) * w


def _ref_layer(positions, hidden_states, residual, p, cfg):
    H, Hk, D = cfg["num_heads"], cfg["num_kv_heads"], cfg["head_dim"]
    T = hidden_states.shape[0]
    hp = jax.lax.Precision.HIGHEST

    if residual is None:
        residual = hidden_states
        h = _ref_rms(hidden_states, p["input_ln_w"], cfg["rms_eps"])
    else:
        s = hidden_states + residual
        residual = s
        h = _ref_rms(s, p["input_ln_w"], cfg["rms_eps"])

    qkv = jnp.dot(h, p["w_qkv"], precision=hp)
    q = qkv[:, :H * D].reshape(T, H, D)
    k = qkv[:, H * D:H * D + Hk * D].reshape(T, Hk, D)
    v = qkv[:, H * D + Hk * D:].reshape(T, Hk, D)

    def ln(x, w, b):
        m = x.mean(-1, keepdims=True)
        var = ((x - m) ** 2).mean(-1, keepdims=True)
        return (x - m) * lax.rsqrt(var + cfg["ln_eps"]) * w + b

    q = ln(q, p["q_norm_w"], p["q_norm_b"])
    k = ln(k, p["k_norm_w"], p["k_norm_b"])

    inv_freq = 1.0 / (cfg["rope_theta"] ** (
        jnp.arange(0, D, 2, dtype=jnp.float32) / D))
    f = positions.astype(jnp.float32)[:, None] * inv_freq[None, :]
    cos, sin = jnp.cos(f), jnp.sin(f)

    def rope(x):
        x1, x2 = x[..., :D // 2], x[..., D // 2:]
        c, s_ = cos[:, None, :], sin[:, None, :]
        return jnp.concatenate([x1 * c - x2 * s_, x2 * c + x1 * s_], axis=-1)

    q, k = rope(q), rope(k)
    rep = H // Hk
    k = jnp.repeat(k, rep, axis=1)
    vv = jnp.repeat(v, rep, axis=1)

    scale = D ** -0.5
    scores = jnp.einsum("thd,shd->hts", q, k, precision=hp) * scale
    mask = jnp.tril(jnp.ones((T, T), dtype=bool))
    scores = jnp.where(mask[None], scores, -jnp.inf)
    pattn = jax.nn.softmax(scores, axis=-1)
    o = jnp.einsum("hts,shd->thd", pattn, vv, precision=hp).reshape(T, H * D)
    o = jnp.dot(o, p["w_o"], precision=hp)

    s2 = o + residual
    residual = s2
    h2 = _ref_rms(s2, p["post_ln_w"], cfg["rms_eps"])
    g = jnp.dot(h2, p["w_gate_up"][0], precision=hp)
    u = jnp.dot(h2, p["w_gate_up"][1], precision=hp)
    inter = jax.nn.silu(g) * u
    out = jnp.dot(inter, p["w_down"], precision=hp)
    return out, residual


# ---------------------------------------------------------------------------
if __name__ == "__main__":
    key = jax.random.PRNGKey(0)
    keys = jax.random.split(key, 16)

    T, hidden = 16, 32
    H, Hk = 4, 2
    D = hidden // H
    I = 64
    cfg = dict(num_heads=H, num_kv_heads=Hk, head_dim=D,
               rms_eps=1e-6, ln_eps=1e-5, rope_theta=10000.0)

    x = jax.random.normal(keys[0], (T, hidden), dtype=jnp.float32)
    positions = jnp.arange(T, dtype=jnp.int32)

    def w(k_, shape, scale=0.05):
        return jax.random.normal(k_, shape, dtype=jnp.float32) * scale

    params = {
        "input_ln_w": 1.0 + 0.1 * jax.random.normal(keys[1], (hidden,), jnp.float32),
        "post_ln_w": 1.0 + 0.1 * jax.random.normal(keys[2], (hidden,), jnp.float32),
        "w_qkv": w(keys[3], (hidden, (H + 2 * Hk) * D)),
        "w_o": w(keys[4], (H * D, hidden)),
        "q_norm_w": 1.0 + 0.1 * jax.random.normal(keys[5], (H, D), jnp.float32),
        "q_norm_b": 0.05 * jax.random.normal(keys[6], (H, D), jnp.float32),
        "k_norm_w": 1.0 + 0.1 * jax.random.normal(keys[7], (Hk, D), jnp.float32),
        "k_norm_b": 0.05 * jax.random.normal(keys[8], (Hk, D), jnp.float32),
        # fused gate/up weight (as stored by MergedColumnParallelLinear)
        "w_gate_up": w(keys[9], (2, hidden, I)),
        "w_down": w(keys[11], (I, hidden)),
    }

    # First layer call (residual=None path), then a second call with carried
    # residual to exercise the fused-add input path.  attn tiles of 8 force
    # multiple kv blocks so the causal skip / clamped index_map / online
    # softmax paths are all exercised.
    h1, r1 = chameleon_decoder_layer(positions, x, None, params,
                                     attn_tq=8, attn_tk=8, **cfg)
    h2, r2 = chameleon_decoder_layer(positions, h1, r1, params,
                                     attn_tq=8, attn_tk=8, **cfg)
    h2 = jax.block_until_ready(h2)
    r2 = jax.block_until_ready(r2)

    rh1, rr1 = _ref_layer(positions, x, None, params, cfg)
    rh2, rr2 = _ref_layer(positions, rh1, rr1, params, cfg)

    assert h2.shape == (T, hidden) and r2.shape == (T, hidden)
    assert jnp.allclose(h2, rh2, atol=1e-2, rtol=1e-2), \
        float(jnp.max(jnp.abs(h2 - rh2)))
    assert jnp.allclose(r2, rr2, atol=1e-2, rtol=1e-2), \
        float(jnp.max(jnp.abs(r2 - rr2)))
    print("KERNEL_OK")
</pallas_src>

<mosaic_0001>
module attributes {stable_mosaic.version = 11 : i64} {
  func.func @_rmsnorm_kernel(%arg0: i32, %arg1: memref<16x32xf32, #tpu.memory_space<vmem>>, %arg2: memref<1x32xf32, #tpu.memory_space<vmem>>, %arg3: memref<16x32xf32, #tpu.memory_space<vmem>>) attributes {dimension_semantics = [#tpu.dimension_semantics<parallel>], iteration_bounds = array<i64: 1>, scalar_prefetch = 0 : i64, scratch_operands = 0 : i64, tpu.core_type = #tpu.core_type<tc>, window_params = [{transform_indices = @transform_0, window_bounds = array<i64: 16, 32>}, {pipeline_mode = #tpu.pipeline_mode<synchronous>, transform_indices = @transform_1, window_bounds = array<i64: 1, 32>}, {transform_indices = @transform_2, window_bounds = array<i64: 16, 32>}]} {
    %c0 = arith.constant 0 : index
    %c0_0 = arith.constant 0 : index
    %0 = vector.load %arg1[%c0, %c0_0] : memref<16x32xf32, #tpu.memory_space<vmem>>, vector<16x32xf32>
    %1 = arith.mulf %0, %0 : vector<16x32xf32>
    %cst = arith.constant dense<0.000000e+00> : vector<16xf32>
    %2 = vector.multi_reduction <add>, %1, %cst [1] : vector<16x32xf32> to vector<16xf32>
    %3 = vector.shape_cast %2 : vector<16xf32> to vector<16x1xf32>
    %cst_1 = arith.constant 3.200000e+01 : f32
    %4 = vector.broadcast %cst_1 : f32 to vector<16x1xf32>
    %5 = arith.divf %3, %4 : vector<16x1xf32>
    %cst_2 = arith.constant 9.99999997E-7 : f32
    %6 = vector.broadcast %cst_2 : f32 to vector<16x1xf32>
    %7 = arith.addf %5, %6 : vector<16x1xf32>
    %8 = math.rsqrt %7 : vector<16x1xf32>
    %9 = vector.broadcast %8 : vector<16x1xf32> to vector<16x32xf32>
    %10 = arith.mulf %0, %9 : vector<16x32xf32>
    %c0_3 = arith.constant 0 : index
    %c0_4 = arith.constant 0 : index
    %11 = vector.load %arg2[%c0_3, %c0_4] : memref<1x32xf32, #tpu.memory_space<vmem>>, vector<1x32xf32>
    %12 = vector.broadcast %11 : vector<1x32xf32> to vector<16x32xf32>
    %13 = arith.mulf %10, %12 : vector<16x32xf32>
    %c0_5 = arith.constant 0 : index
    %c0_6 = arith.constant 0 : index
    %14 = vector.load %arg3[%c0_5, %c0_6] : memref<16x32xf32, #tpu.memory_space<vmem>>, vector<16x32xf32>
    tpu.vector_store %arg3[%c0_5, %c0_6], %13 {strides = array<i32>} : memref<16x32xf32, #tpu.memory_space<vmem>>, vector<16x32xf32>,
    return
  }
  func.func @transform_0(%arg0: i32) -> (i32, i32) {
    %c0_i32 = arith.constant 0 : i32
    %c0_i32_0 = arith.constant 0 : i32
    return %arg0, %c0_i32 : i32, i32
  }
  func.func @transform_1(%arg0: i32) -> (i32, i32) {
    %c0_i32 = arith.constant 0 : i32
    %c0_i32_0 = arith.constant 0 : i32
    %c0_i32_1 = arith.constant 0 : i32
    return %c0_i32, %c0_i32_0 : i32, i32
  }
  func.func @transform_2(%arg0: i32) -> (i32, i32) {
    %c0_i32 = arith.constant 0 : i32
    %c0_i32_0 = arith.constant 0 : i32
    return %arg0, %c0_i32 : i32, i32
  }
}

</mosaic_0001>

<bundles_post_ra>
// kernel: tpu_custom_call.1
= control target key start
LH: loop header
LB: loop body
LE: loop exit
PB: predicated region body
PF: predicated region fallthrough
CT: control target
= control target key end

     0   :  { %7 = vsyncpa [#allocation3], 0  ;;  %s187_s0 = inlined_call_operand.hbm [shape: f32[16,32], index: 0, kind: input, shape index: {}]   ;;  %s188_s1 = inlined_call_operand.vmem [shape: f32[1,32], index: 1, kind: input, shape index: {}]   ;;  %s189_s2 = inlined_call_operand.hbm [shape: f32[16,32], index: 2, kind: output, shape index: {}]  }
   0x1   :  { %8 = vsyncpa [#allocation4], 0  ;;  %s131_s9 = smov [#allocation2]   ;;  %s83_s13 = scalar_lea.hbm %s187_s0, 256 }
   0x2   :  { %s14_s10 = sshll.u32 %s131_s9, 4  ;;  %p84_p0 = scmp.ne.s32.totalorder %s187_s0, %s83_s13  ;;  %s15_s10 = int_to_ptr.vmem [resolvable:$true] %s14_s10 }
   0x3   :  { %p87_p1 = scmp.lt.u32.totalorder %s83_s13, %s187_s0 }
   0x5   :  { %p89_p2 = pnand %p87_p1, %p84_p0 }
   0x7   :  { %92 = shalt.err (!%p89_p2)
}
   0x8   :  { %s93_s18 = scalar_lea.vmem %s15_s10, 256  ;;  %p98_p4 = scmp.lt.s32.totalorder %s15_s10, %s15_s10 }
   0x9   :  { %p94_p3 = scmp.ne.s32.totalorder %s15_s10, %s93_s18  ;;  %p99_p5 = scmp.lt.s32.totalorder %s93_s18, %s93_s18 }
   0xb   :  { %p100_p6 = por %p99_p5, %p98_p4 }
   0xd   :  { %p101_p7 = pnand %p100_p6, %p94_p3 }
   0xf   :  { %104 = shalt.err (!%p101_p7)
}
  0x10   :  { %s132_s19 = smov 128   ;;  %s133_s20 = smov 8  }
  0x11   :  { %20 = dma.hbm_to_vmem [thread:$0]  %s187_s0, 256, %s15_s10, [#allocation3], %s132_s19, %s132_s19, %s133_s20  }
  0x12   :  { %127 = dma.done.wait [#allocation3], 256  }
  0x13   :  { %128 = vsyncadd [#allocation3], 4294967040  ;;  %v26_v0 = vld [vmem:[#allocation2] sm:$0xff]  ;;  %vm30_vm0 = vcmask 261120   ;;  %v27_v1 = vld [vmem:[#allocation2 + $0x8] sm:$0xff]  ;;  %s134_s24 = smov [#allocation5]  }
  0x14   :  { %v28_v2 = vmul.f32 %v26_v0, %v26_v0  ;;  %v29_v3 = vmul.f32 %v27_v1, %v27_v1  ;;  %v74_v13 = vld [vmem:[%s188_s1] ss:$0 sm:$0xff]  ;;  %s62_s25 = sshll.u32 %s134_s24, 4  ;;  %s63_s25 = int_to_ptr.vmem [resolvable:$true] %s62_s25 }
  0x15   :  { %s105_s26 = scalar_lea.vmem %s63_s25, 256  ;;  %p110_p9 = scmp.lt.s32.totalorder %s63_s25, %s63_s25 }
  0x16   :  { %v31_v4 = vsel %vm30_vm0, %v28_v2, 0.0  ;;  %v34_v5 = vsel %vm30_vm0, %v29_v3, 0.0  ;;  %p106_p8 = scmp.ne.s32.totalorder %s63_s25, %s105_s26  ;;  %p111_p10 = scmp.lt.s32.totalorder %s105_s26, %s105_s26 }
  0x17   :  { %32 = vadd.xlane.f32.xlu0 %v31_v4 }
  0x18   :  { %p112_p11 = por %p111_p10, %p110_p9 }
  0x1a   :  { %p113_p12 = pnand %p112_p11, %p106_p8 }
  0x1b   :  { %35 = vadd.xlane.f32.xlu0 %v34_v5 }
  0xa4   :  { %v33_v6 = vpop.xlane.xlu0 %32 }
  0xa5   :  { %v38_v7 = vmul.f32 0.03125, %v33_v6 }
  0xa7   :  { %v40_v8 = vadd.f32 1e-06, %v38_v7 }
  0xa8   :  { %v36_v9 = vpop.xlane.xlu0 %35 }
  0xa9   :  { %79 = vrsqrt.f32 %v40_v8  ;;  %v39_v10 = vmul.f32 0.03125, %v36_v9 }
  0xab   :  { %v41_v11 = vadd.f32 1e-06, %v39_v10 }
  0xad   :  { %81 = vrsqrt.f32 %v41_v11 }
  0xb3   :  { %v80_v12 = vpop.eup %79 }
  0xb4   :  { %v44_v14 = vmul.f32 %v80_v12, %v26_v0 }
  0xb6   :  { %v53_v15 = vmul.f32 %v74_v13, %v44_v14 }
  0xb7   :  { %v82_v16 = vpop.eup %81 }
  0xb8   :  { %v45_v17 = vmul.f32 %v82_v16, %v27_v1  ;;  %55 = vst.msk [vmem:[#allocation5] sm:$0xff] %vm30_vm0, %v53_v15 }
  0xba   :  { %v54_v18 = vmul.f32 %v74_v13, %v45_v17 }
  0xbc   :  { %56 = vst.msk [vmem:[#allocation5 + $0x8] sm:$0xff] %vm30_vm0, %v54_v18 }
  0xbd   :  { %116 = shalt.err (!%p113_p12)
}
  0xbe   :  { %s117_s28 = scalar_lea.hbm %s189_s2, 256 }
  0xbf   :  { %p118_p13 = scmp.ne.s32.totalorder %s189_s2, %s117_s28  ;;  %p121_p0 = scmp.lt.u32.totalorder %s117_s28, %s189_s2 }
  0xc1   :  { %p123_p1 = pnand %p121_p0, %p118_p13 }
  0xc3   :  { %126 = shalt.err (!%p123_p1)
}
  0xc4   :  { %68 = dma.vmem_to_hbm [thread:$0]  %s63_s25, 256, %s189_s2, [#allocation4], %s132_s19, %s132_s19, %s133_s20  }
  0xc5   :  { %129 = dma.done.wait [#allocation4], 256  }
  0xc6   :  { %130 = vsyncadd [#allocation4], 4294967040 }
  0xc7   :  { %72 = vsyncpa [#allocation3], 1 }
  0xc8   :  { %73 = vsyncpa [#allocation4], 1 }

</bundles_post_ra>
